<compile_context>
chip_gen: v7x
topology: tpu7x:2x2x1
jax: 0.10.0
libtpu: 0.0.40
codegen_flags: <defaults>
</compile_context>

<pallas_src>
import jax
import jax.numpy as jnp
from jax import lax
from jax.experimental import pallas as pl
from jax.experimental.pallas import tpu as pltpu

# Small stand-ins for the original sizes (C_in=512, C_out=1792, L=100)
C_IN = 128     # conv in_channels
C_OUT = 256    # conv out_channels (multiple of 128 -> lane-dense output)
L = 96         # sequence length (multiple of 8; sits on the sublane axis)
TILE_N = 128   # C_out tile (lane-dense); C_OUT // TILE_N = 2 tiles (even, v7x-friendly)
BN_EPS = 1e-5


def conv1x1_bn_kernel(x_ref, wt_ref, o_ref):
    # x_ref : (C_in, L)      -- natural NCL layout (batch=1 squeezed), pinned block
    # wt_ref: (C_in, TILE_N) -- pre-transposed weight tile
    # o_ref : (L, TILE_N)    -- lane-dense output tile
    #
    # Conv1d(kernel_size=1) == channel matmul on the MXU.  Contract the lhs on
    # dim 0 so the output lands directly in the lane-dense (L, TILE_N) layout.
    y = lax.dot_general(
        x_ref[...], wt_ref[...],
        dimension_numbers=(((0,), (0,)), ((), ())),
        preferred_element_type=jnp.float32,
    )
    # NOTE: conv bias omitted on purpose -- a per-channel constant is cancelled
    # by the BatchNorm mean subtraction below (numerically identical output).

    # BatchNorm1d, training mode: per-output-channel stats over (batch=1, L),
    # i.e. over axis 0 of this tile.  Centered tensor computed once, reused.
    mean = jnp.mean(y, axis=0, keepdims=True)           # (1, TILE_N)
    d = y - mean
    var = jnp.mean(d * d, axis=0, keepdims=True)        # biased variance
    # gamma=1, beta=0 (default BN affine init) -> identity epilogue dropped.
    o_ref[...] = d * lax.rsqrt(var + BN_EPS)


@jax.jit
def conv1x1_bn(x_cl, w_t):
    """x_cl: (C_in, L) natural layout; w_t: (C_in, C_out) pre-transposed weight.
    Returns (1, C_out, L)."""
    out_lc = pl.pallas_call(
        conv1x1_bn_kernel,
        out_shape=jax.ShapeDtypeStruct((L, C_OUT), jnp.float32),
        grid=(C_OUT // TILE_N,),
        in_specs=[
            pl.BlockSpec((C_IN, L), lambda j: (0, 0)),        # x pinned across tiles
            pl.BlockSpec((C_IN, TILE_N), lambda j: (0, j)),   # weight tile streams in
        ],
        out_specs=pl.BlockSpec((L, TILE_N), lambda j: (0, j)),
        compiler_params=pltpu.CompilerParams(
            dimension_semantics=("parallel",),   # independent C_out tiles; megacore-shardable
        ),
    )(x_cl, w_t)
    # Back to NCL (1, C_out, L); fused into the same executable by jit.
    return jnp.transpose(out_lc)[None, :, :]


class Model:
    """JAX/Pallas port: output3 is precomputed in __init__, forward ignores x."""

    def __init__(self, key):
        k_inp, k_w, k_b = jax.random.split(key, 3)
        # Synthetic parameters with nn.Conv1d-style init bounds (kernel_size=1).
        fan_in = C_IN
        bound = 1.0 / jnp.sqrt(fan_in)
        self.input_tensor = jax.random.normal(k_inp, (1, C_IN, L), jnp.float32)
        self.weight = jax.random.uniform(k_w, (C_OUT, C_IN), jnp.float32, -bound, bound)
        self.bias = jax.random.uniform(k_b, (C_OUT,), jnp.float32, -bound, bound)
        # BatchNorm1d default affine init: gamma=1, beta=0 (identity -> not
        # passed to the kernel; kept for the reference check).
        self.gamma = jnp.ones((C_OUT,), jnp.float32)
        self.beta = jnp.zeros((C_OUT,), jnp.float32)

        # Static weight pre-transposed ONCE (not per call).
        self.weight_t = jnp.transpose(self.weight)   # (C_in, C_out)

        # Bias intentionally NOT passed: BN mean-subtraction cancels it.
        self.output3 = conv1x1_bn(self.input_tensor[0], self.weight_t)

    def forward(self, x):
        # Matches PyTorch: x is ignored, precomputed output3 is returned.
        return self.output3


def _reference(inp_ncl, weight, bias, gamma, beta):
    # Full-fidelity reference WITH bias and gamma/beta, to validate that the
    # kernel's algebraic simplifications are exact.
    y = jnp.einsum("oc,bcl->bol", weight, inp_ncl) + bias[None, :, None]
    mean = jnp.mean(y, axis=(0, 2), keepdims=True)
    var = jnp.mean((y - mean) ** 2, axis=(0, 2), keepdims=True)
    y_hat = (y - mean) / jnp.sqrt(var + BN_EPS)
    return y_hat * gamma[None, :, None] + beta[None, :, None]


if __name__ == "__main__":
    key = jax.random.PRNGKey(0)
    model = Model(key)

    # forward input (ignored by the module, like the PyTorch original)
    x = jax.random.normal(jax.random.PRNGKey(1), (1, C_IN, L), jnp.float32)

    out = model.forward(x)
    out = jax.block_until_ready(out)

    ref = _reference(model.input_tensor, model.weight, model.bias,
                     model.gamma, model.beta)
    assert out.shape == (1, C_OUT, L), out.shape
    assert jnp.allclose(out, ref, atol=1e-4, rtol=1e-4), "mismatch vs reference"

    print("KERNEL_OK")
</pallas_src>

<mosaic_0001>
module attributes {stable_mosaic.version = 11 : i64} {
  func.func @conv1x1_bn_kernel(%arg0: i32, %arg1: memref<128x96xf32, #tpu.memory_space<vmem>>, %arg2: memref<128x128xf32, #tpu.memory_space<vmem>>, %arg3: memref<96x128xf32, #tpu.memory_space<vmem>>) attributes {dimension_semantics = [#tpu.dimension_semantics<parallel>], iteration_bounds = array<i64: 2>, scalar_prefetch = 0 : i64, scratch_operands = 0 : i64, tpu.core_type = #tpu.core_type<tc>, window_params = [{pipeline_mode = #tpu.pipeline_mode<synchronous>, transform_indices = @transform_0, window_bounds = array<i64: 128, 96>}, {transform_indices = @transform_1, window_bounds = array<i64: 128, 128>}, {transform_indices = @transform_2, window_bounds = array<i64: 96, 128>}]} {
    %c0 = arith.constant 0 : index
    %c0_0 = arith.constant 0 : index
    %0 = vector.load %arg1[%c0, %c0_0] : memref<128x96xf32, #tpu.memory_space<vmem>>, vector<128x96xf32>
    %c0_1 = arith.constant 0 : index
    %c0_2 = arith.constant 0 : index
    %1 = vector.load %arg2[%c0_1, %c0_2] : memref<128x128xf32, #tpu.memory_space<vmem>>, vector<128x128xf32>
    %cst = arith.constant dense<0.000000e+00> : vector<96x128xf32>
    %2 = tpu.matmul %0, %1, %cst {dimension_numbers = #tpu.dot_dimension_numbers<[0], [0], [1], [1], [0, 1, 1, 1], [], []>} : vector<128x96xf32>, vector<128x128xf32>, vector<96x128xf32> -> vector<96x128xf32>
    %cst_3 = arith.constant dense<0.000000e+00> : vector<128xf32>
    %3 = vector.multi_reduction <add>, %2, %cst_3 [0] : vector<96x128xf32> to vector<128xf32>
    %4 = vector.shape_cast %3 : vector<128xf32> to vector<1x128xf32>
    %cst_4 = arith.constant 9.600000e+01 : f32
    %5 = vector.broadcast %cst_4 : f32 to vector<1x128xf32>
    %6 = arith.divf %4, %5 : vector<1x128xf32>
    %7 = vector.broadcast %6 : vector<1x128xf32> to vector<96x128xf32>
    %8 = arith.subf %2, %7 : vector<96x128xf32>
    %9 = arith.mulf %8, %8 : vector<96x128xf32>
    %cst_5 = arith.constant dense<0.000000e+00> : vector<128xf32>
    %10 = vector.multi_reduction <add>, %9, %cst_5 [0] : vector<96x128xf32> to vector<128xf32>
    %11 = vector.shape_cast %10 : vector<128xf32> to vector<1x128xf32>
    %cst_6 = arith.constant 9.600000e+01 : f32
    %12 = vector.broadcast %cst_6 : f32 to vector<1x128xf32>
    %13 = arith.divf %11, %12 : vector<1x128xf32>
    %cst_7 = arith.constant 9.99999974E-6 : f32
    %14 = vector.broadcast %cst_7 : f32 to vector<1x128xf32>
    %15 = arith.addf %13, %14 : vector<1x128xf32>
    %16 = math.rsqrt %15 : vector<1x128xf32>
    %17 = vector.broadcast %16 : vector<1x128xf32> to vector<96x128xf32>
    %18 = arith.mulf %8, %17 : vector<96x128xf32>
    %c0_8 = arith.constant 0 : index
    %c0_9 = arith.constant 0 : index
    %19 = vector.load %arg3[%c0_8, %c0_9] : memref<96x128xf32, #tpu.memory_space<vmem>>, vector<96x128xf32>
    tpu.vector_store %arg3[%c0_8, %c0_9], %18 {strides = array<i32>} : memref<96x128xf32, #tpu.memory_space<vmem>>, vector<96x128xf32>,
    return
  }
  func.func @transform_0(%arg0: i32) -> (i32, i32) {
    %c0_i32 = arith.constant 0 : i32
    %c0_i32_0 = arith.constant 0 : i32
    %c0_i32_1 = arith.constant 0 : i32
    return %c0_i32, %c0_i32_0 : i32, i32
  }
  func.func @transform_1(%arg0: i32) -> (i32, i32) {
    %c0_i32 = arith.constant 0 : i32
    %c0_i32_0 = arith.constant 0 : i32
    return %c0_i32, %arg0 : i32, i32
  }
  func.func @transform_2(%arg0: i32) -> (i32, i32) {
    %c0_i32 = arith.constant 0 : i32
    %c0_i32_0 = arith.constant 0 : i32
    return %c0_i32, %arg0 : i32, i32
  }
}

</mosaic_0001>

<bundles_post_ra>
// kernel: conv1x1_bn.1
= control target key start
LH: loop header
LB: loop body
LE: loop exit
PB: predicated region body
PF: predicated region fallthrough
CT: control target
= control target key end

     0   :  { %7 = vsyncpa [#allocation3], 0  ;;  %s1066_s0 = inlined_call_operand.vmem [shape: f32[128,96], index: 0, kind: input, shape index: {}]   ;;  %s1067_s1 = inlined_call_operand.hbm [shape: f32[128,256], index: 1, kind: input, shape index: {}]   ;;  %s1068_s2 = inlined_call_operand.hbm [shape: f32[96,256], index: 2, kind: output, shape index: {}]  }
   0x1   :  { %9 = vsyncpa [#allocation3 + $0x1], 0 }
   0x2   :  { %10 = vsyncpa [#allocation4], 0 }
   0x3   :  { %12 = vsyncpa [#allocation4 + $0x1], 0  ;;  %s835_s9 = smov 0   ;;  %s837_s10 = smov 0  }
   0x4   :  { %s839_s11 = smov 0   ;;  %s841_s12 = smov 0  }
   0x5 LB: > { %s856_s13 = sadd.s32 4294967295, %s810_s12   ;;  %s523_s14 = sadd.s32 4294967294, %s810_s12   ;;  %s810_s12 = sphi %s841_s12, %s1082_s12   ;;  %s806_s11 = sphi %s839_s11, %s1081_s11   ;;  %s802_s10 = sphi %s837_s10, %s1080_s10   ;;  %s798_s9 = sphi %s835_s9, %s1079_s9  }
   0x6   : > { %s860_s15 = sadd.s32 1, %s810_s12   ;;  %s46_s16 = sadd.s32 1, %s806_s11 }
   0x7   : > { %s43_s17 = ssub.s32 %s810_s12, %s860_s15  ;;  %p53_p0 = scmp.ne.s32.totalorder %s806_s11, %s802_s10 }
   0x8   : > { %p44_p1 = scmp.eq.s32.totalorder %s43_s17, 0  ;;  %p54_p2 = scmp.eq.s32.totalorder %s810_s12, 0 }
   0x9   : > { %p59_p3 = scmp.ne.s32.totalorder %s802_s10, %s798_s9  ;;  %p60_p4 = scmp.eq.s32.totalorder %s856_s13, 0 }
   0xa   : > { %s872_s18 = scalar_select %p44_p1, %s806_s11, %s46_s16  }
   0xb   : > { %p874_p5 = por %p54_p2, %p53_p0  ;;  %p878_p6 = por %p60_p4, %p59_p3 }
   0xc   : > { %p83_p7 = scmp.eq.s32.totalorder %s856_s13, 1  ;;  %p89_p8 = scmp.eq.s32.totalorder %s523_s14, 1 }
   0xd   : > { %p672_p10 = scmp.lt.s32.totalorder %s810_s12, 2  ;;  %s112_s23 = sand.u32 1, %s806_s11  }
   0xe   : > { %p885_p11 = por %p83_p7, %p53_p0  ;;  %p889_p12 = por %p89_p8, %p59_p3 }
   0xf   : > { %s527_s24 = sshll.u32 %s810_s12, 7  ;;  %s526_s25 = sshll.u32 %s112_s23, 7 }
  0x10   : > { %s1072_s21 = scalar_select %p885_p11, 1, 0 }
  0x11   : > { %s1073_s22 = scalar_select %p889_p12, 1, 0 }
  0x12   : > { %s898_s28 = scalar_lea.hbm %s1067_s1, %s527_s24  ;;  %s116_s29 = scalar_lea.vmem [#allocation2], %s526_s25 }
  0x13   : > { %s122_s30 = sshll.u32 %s116_s29, 4  ;;  %p902_p13 = pnand %p672_p10, %p874_p5  ;;  %s906_s30 = int_to_ptr.vmem [resolvable:$true] %s122_s30 }
  0x14   : > { %s909_s4 = scalar_lea.sflag [#allocation3], %s112_s23  ;;  %s714_s5 = scalar_lea.hbm %s898_s28, 2048 }
  0x15   : > { %p715_p1 = scmp.ne.s32.totalorder %s898_s28, %s714_s5  ;;  %p716_p2 = pneg %p902_p13 }
  0x16   : > { %s719_s8 = scalar_lea.hbm %s1067_s1, 4096  ;;  %p720_p5 = scmp.lt.u32.totalorder %s898_s28, %s1067_s1 }
  0x17   : > { %p717_p3 = pnand %p716_p2, %p715_p1  ;;  %p721_p7 = scmp.lt.u32.totalorder %s719_s8, %s714_s5 }
  0x18   : > { %p723_p10 = scmp.lt.u32.totalorder %s714_s5, %s898_s28 }
  0x19   : > { %p718_p4 = pneg %p717_p3  ;;  %p722_p8 = por %p721_p7, %p720_p5 }
  0x1b   : > { %p724_p9 = por %p723_p10, %p722_p8 }
  0x1d   : > { %p725_p0 = pnand %p724_p9, %p718_p4 }
  0x1f   : > { %728 = shalt.err (!%p725_p0)
}
  0x20   : > { %s729_s17 = scalar_lea.vmem %s906_s30, 2048  ;;  %s812_s19 = smov [#allocation2]  }
  0x21   : > { %p730_p1 = scmp.ne.s32.totalorder %s906_s30, %s729_s17  ;;  %s734_s23 = sshll.u32 %s812_s19, 4  ;;  %s735_s23 = int_to_ptr.vmem [resolvable:$false] %s734_s23 }
  0x22   : > { %s736_s24 = scalar_lea.vmem %s735_s23, 4096  ;;  %p737_p11 = scmp.lt.s32.totalorder %s906_s30, %s735_s23 }
  0x23   : > { %p732_p3 = pnand %p730_p1, %p716_p2  ;;  %p738_p5 = scmp.lt.s32.totalorder %s736_s24, %s729_s17 }
  0x25   : > { %p733_p12 = pneg %p732_p3  ;;  %p739_p7 = por %p738_p5, %p737_p11 }
  0x27   : > { %p740_p8 = pnand %p739_p7, %p733_p12 }
  0x29   : > { %743 = shalt.err (!%p740_p8)
}
  0x2a   : > { %s813_s25 = smov 256   ;;  %s814_s26 = smov 128  }
  0x2b   : > { %s815_s27 = smov 8   ;;  %p130_p9 = scmp.lt.s32.totalorder %s810_s12, 3 }
  0x2c   : > { %667 = dma.hbm_to_vmem [thread:$0]  (!%p902_p13), %s898_s28, 2048, %s906_s30, %s909_s4, %s813_s25, %s814_s26, %s815_s27  }
  0x2d   : > { %p1075_p0 = scmp.ge.s32.totalorder %s810_s12, 1 }
  0x2f   : > { %p131_p2 = pnand %p1075_p0, %p130_p9 }
  0x30   : > { %s941_s29 = sand.u32 (!%p131_p2), 1, %s802_s10  }
  0x31   : > { %134 = sbr.rel (%p131_p2) target bundleno = 540 (0x21c), region = 28  ;;  %s529_s5 = sshll.u32 (!%p131_p2), %s941_s29, 7 }
  0x32   : > { %s137_s6 = scalar_lea.sflag (!%p131_p2), [#allocation3], %s941_s29  ;;  %s945_s7 = scalar_lea.vmem (!%p131_p2), [#allocation2], %s529_s5 }
  0x38   : > { %789 = dma.done.wait (%p878_p6), %s137_s6, 2048  }
  0x39   : > { %791 = vsyncadd (%p878_p6), %s137_s6, 4294965248  ;;  %v161_v0 = vld [vmem:[%s1066_s0] sm:$0xff]  ;;  %v162_v1 = vld [vmem:[%s1066_s0 + $0x8] sm:$0xff]  ;;  %s659_s27 = smul.u32 96, %s941_s29  ;;  %s530_s5 = sshll.u32 %s856_s13, 7 }
  0x3a   : > { %193 = vxpose.xlu0.b32.start [1/16] (narrow) %v161_v0, 96  ;;  %v177_v2 = vld [vmem:[%s945_s7] sm:$0xff]  ;;  %v178_v3 = vld [vmem:[%s945_s7 + $0x8] sm:$0xff]  ;;  %v163_v4 = vld [vmem:[%s1066_s0 + $0x10] sm:$0xff]  ;;  %s438_s13 = scalar_lea.sflag [#allocation4], %s941_s29  ;;  %p1076_p11 = scmp.ne.s32.totalorder %s1072_s21, 0 }
  0x3b   : > { %v611_v5 = vpack.c.bf16 %v178_v3, %v177_v2  ;;  %v179_v6 = vld [vmem:[%s945_s7 + $0x10] sm:$0xff]  ;;  %v180_v7 = vld [vmem:[%s945_s7 + $0x18] sm:$0xff]  ;;  %v181_v9 = vld [vmem:[%s945_s7 + $0x20] sm:$0xff]  ;;  %s160_s6 = scalar_lea.vmem [#allocation5], %s659_s27  ;;  %s816_s20 = smov [#allocation5]  }
  0x3c   : > { %v615_v8 = vpack.c.bf16 %v180_v7, %v179_v6  ;;  %v182_v10 = vld [vmem:[%s945_s7 + $0x28] sm:$0xff]  ;;  %v164_v11 = vld [vmem:[%s1066_s0 + $0x18] sm:$0xff]  ;;  %v183_v13 = vld [vmem:[%s945_s7 + $0x30] sm:$0xff]  ;;  %s450_s28 = sshll.u32 %s160_s6, 4  ;;  %s748_s8 = sshll.u32 %s816_s20, 4  ;;  %s1022_s28 = int_to_ptr.vmem [resolvable:$true] %s450_s28  ;;  %s749_s8 = int_to_ptr.vmem [resolvable:$false] %s748_s8 }
  0x3d   : > { %612 = vmatprep.subr.bf16.mxu0 %v611_v5  ;;  %643 = vmatprep.subr.bf16.mxu1 %v611_v5  ;;  %v619_v12 = vpack.c.bf16 %v182_v10, %v181_v9  ;;  %v184_v14 = vld [vmem:[%s945_s7 + $0x38] sm:$0xff]  ;;  %v165_v15 = vld [vmem:[%s1066_s0 + $0x20] sm:$0xff]  ;;  %v186_v18 = vld [vmem:[%s945_s7 + $0x48] sm:$0xff]  ;;  %s744_s4 = scalar_lea.vmem %s1022_s28, 1536  ;;  %s750_s14 = scalar_lea.vmem %s749_s8, 3072 }
  0x3e   : > { %194 = vxpose.xlu0.b32.cont [2/16] (narrow) %v162_v1, 96  ;;  %614 = vmatpush3.bf16.msra.mxu0 %v611_v5  ;;  %v623_v16 = vpack.c.bf16 %v184_v14, %v183_v13  ;;  %v185_v17 = vld [vmem:[%s945_s7 + $0x40] sm:$0xff]  ;;  %v166_v19 = vld [vmem:[%s1066_s0 + $0x28] sm:$0xff]  ;;  %v187_v21 = vld [vmem:[%s945_s7 + $0x50] sm:$0xff]  ;;  %p745_p6 = scmp.ne.s32.totalorder %s1022_s28, %s744_s4  ;;  %p751_p4 = scmp.lt.s32.totalorder %s1022_s28, %s749_s8 }
  0x3f   : > { %616 = vmatprep.subr.bf16.mxu0 %v615_v8  ;;  %651 = vmatpush3.bf16.msra.mxu1 %v611_v5  ;;  %v627_v20 = vpack.c.bf16 %v186_v18, %v185_v17  ;;  %v188_v22 = vld [vmem:[%s945_s7 + $0x58] sm:$0xff]  ;;  %v167_v23 = vld [vmem:[%s1066_s0 + $0x30] sm:$0xff]  ;;  %v189_v25 = vld [vmem:[%s945_s7 + $0x60] sm:$0xff]  ;;  %p752_p10 = scmp.lt.s32.totalorder %s750_s14, %s744_s4 }
  0x40   : > { %644 = vmatprep.subr.bf16.mxu1 %v615_v8  ;;  %v631_v24 = vpack.c.bf16 %v188_v22, %v187_v21  ;;  %v190_v26 = vld [vmem:[%s945_s7 + $0x68] sm:$0xff]  ;;  %v168_v27 = vld [vmem:[%s1066_s0 + $0x38] sm:$0xff]  ;;  %v191_v29 = vld [vmem:[%s945_s7 + $0x70] sm:$0xff]  ;;  %p746_p12 = pnand %p745_p6, %p1076_p11 }
  0x41   : > { %v635_v28 = vpack.c.bf16 %v190_v26, %v189_v25  ;;  %v192_v30 = vld [vmem:[%s945_s7 + $0x78] sm:$0xff]  ;;  %v169_v31 = vld [vmem:[%s1066_s0 + $0x40] sm:$0xff]  ;;  %v170_v33 = vld [vmem:[%s1066_s0 + $0x48] sm:$0xff]  ;;  %s1020_s7 = scalar_lea.hbm %s1068_s2, %s530_s5  ;;  %p753_p1 = por %p752_p10, %p751_p4 }
  0x42   : > { %195 = vxpose.xlu0.b32.cont [3/16] (narrow) %v163_v4, 96  ;;  %618 = vmatpush3.bf16.msra.mxu0 %v615_v8  ;;  %v639_v32 = vpack.c.bf16 %v192_v30, %v191_v29  ;;  %v171_v34 = vld [vmem:[%s1066_s0 + $0x50] sm:$0xff]  ;;  %v172_v35 = vld [vmem:[%s1066_s0 + $0x58] sm:$0xff]  ;;  %v173_v36 = vld [vmem:[%s1066_s0 + $0x60] sm:$0xff]  ;;  %p747_p13 = pneg %p746_p12 }
  0x43   : > { %620 = vmatprep.subr.bf16.mxu0 %v619_v12  ;;  %652 = vmatpush3.bf16.msra.mxu1 %v615_v8  ;;  %v174_v37 = vld [vmem:[%s1066_s0 + $0x68] sm:$0xff]  ;;  %v175_v38 = vld [vmem:[%s1066_s0 + $0x70] sm:$0xff]  ;;  %v176_v39 = vld [vmem:[%s1066_s0 + $0x78] sm:$0xff] }
  0x44   : > { %645 = vmatprep.subr.bf16.mxu1 %v619_v12  ;;  %p754_p3 = pnand %p753_p1, %p747_p13 }
  0x46   : > { %196 = vxpose.xlu0.b32.cont [4/16] (narrow) %v164_v11, 96  ;;  %622 = vmatpush3.bf16.msra.mxu0 %v619_v12 }
  0x47   : > { %624 = vmatprep.subr.bf16.mxu0 %v623_v16  ;;  %653 = vmatpush3.bf16.msra.mxu1 %v619_v12 }
  0x48   : > { %646 = vmatprep.subr.bf16.mxu1 %v623_v16 }
  0x4a   : > { %197 = vxpose.xlu0.b32.cont [5/16] (narrow) %v165_v15, 96  ;;  %626 = vmatpush3.bf16.msra.mxu0 %v623_v16 }
  0x4b   : > { %628 = vmatprep.subr.bf16.mxu0 %v627_v20  ;;  %654 = vmatpush3.bf16.msra.mxu1 %v623_v16 }
  0x4c   : > { %647 = vmatprep.subr.bf16.mxu1 %v627_v20 }
  0x4e   : > { %198 = vxpose.xlu0.b32.cont [6/16] (narrow) %v166_v19, 96  ;;  %630 = vmatpush3.bf16.msra.mxu0 %v627_v20 }
  0x4f   : > { %632 = vmatprep.subr.bf16.mxu0 %v631_v24  ;;  %655 = vmatpush3.bf16.msra.mxu1 %v627_v20 }
  0x50   : > { %648 = vmatprep.subr.bf16.mxu1 %v631_v24 }
  0x52   : > { %199 = vxpose.xlu0.b32.cont [7/16] (narrow) %v167_v23, 96  ;;  %634 = vmatpush3.bf16.msra.mxu0 %v631_v24 }
  0x53   : > { %636 = vmatprep.subr.bf16.mxu0 %v635_v28  ;;  %656 = vmatpush3.bf16.msra.mxu1 %v631_v24 }
  0x54   : > { %649 = vmatprep.subr.bf16.mxu1 %v635_v28 }
  0x56   : > { %200 = vxpose.xlu0.b32.cont [8/16] (narrow) %v168_v27, 96  ;;  %638 = vmatpush3.bf16.msra.mxu0 %v635_v28 }
  0x57   : > { %640 = vmatprep.subr.bf16.mxu0 %v639_v32  ;;  %657 = vmatpush3.bf16.msra.mxu1 %v635_v28 }
  0x58   : > { %650 = vmatprep.subr.bf16.mxu1 %v639_v32 }
  0x5a   : > { %201 = vxpose.xlu0.b32.cont [9/16] (narrow) %v169_v31, 96  ;;  %642 = vmatpush3.bf16.msra.mxu0 %v639_v32 }
  0x5b   : > { %658 = vmatpush3.bf16.msra.mxu1 %v639_v32 }
  0x5e   : > { %202 = vxpose.xlu0.b32.cont [10/16] (narrow) %v170_v33, 96 }
  0x62   : > { %203 = vxpose.xlu0.b32.cont [11/16] (narrow) %v171_v34, 96 }
  0x66   : > { %204 = vxpose.xlu0.b32.cont [12/16] (narrow) %v172_v35, 96 }
  0x6a   : > { %205 = vxpose.xlu0.b32.cont [13/16] (narrow) %v173_v36, 96 }
  0x6e   : > { %206 = vxpose.xlu0.b32.cont [14/16] (narrow) %v174_v37, 96 }
  0x72   : > { %207 = vxpose.xlu0.b32.cont [15/16] (narrow) %v175_v38, 96 }
  0x76   : > { %208 = vxpose.xlu0.b32.end [16/16] (narrow) %v176_v39, 96 }
  0xba   : > { %v209_v40 = vpop.trf.xlu0 }
  0xbb   : > { %593 = vmatprep.mubr.f32.mxu0 %v209_v40 }
  0xbe   : > { %v210_v41 = vpop.trf.xlu0 }
  0xbf   : > { %594 = vmatmul.mubr.f32.vlgmr.msra.gmra.mrb[0].mxu0 %v210_v41 }
  0xc2   : > { %v211_v42 = vpop.trf.xlu0 }
  0xc3   : > { %596 = vmatprep.mubr.f32.mxu0 %v211_v42 }
  0xc6   : > { %v212_v43 = vpop.trf.xlu0 }
  0xc7   : > { %597 = vmatmul.mubr.f32.gmra.mrb[2].mxu0 %v212_v43 }
  0xca   : > { %v213_v44 = vpop.trf.xlu0 }
  0xcb   : > { %599 = vmatprep.mubr.f32.mxu0 %v213_v44 }
  0xce   : > { %v214_v45 = vpop.trf.xlu0 }
  0xcf   : > { %600 = vmatmul.mubr.f32.gmra.mrb[4].mxu0 %v214_v45 }
  0xd2   : > { %v215_v46 = vpop.trf.xlu0 }
  0xd3   : > { %602 = vmatprep.mubr.f32.mxu1 %v215_v46 }
  0xd6   : > { %v216_v47 = vpop.trf.xlu0 }
  0xd7   : > { %603 = vmatmul.mubr.f32.vlgmr.msra.gmra.mrb[0].mxu1 %v216_v47 }
  0xda   : > { %v217_v48 = vpop.trf.xlu0 }
  0xdb   : > { %605 = vmatprep.mubr.f32.mxu1 %v217_v48 }
  0xde   : > { %v218_v49 = vpop.trf.xlu0 }
  0xdf   : > { %606 = vmatmul.mubr.f32.gmra.mrb[2].mxu1 %v218_v49 }
  0xe2   : > { %v219_v50 = vpop.trf.xlu0 }
  0xe3   : > { %608 = vmatprep.mubr.f32.mxu1 %v219_v50 }
  0xe6   : > { %v220_v51 = vpop.trf.xlu0 }
  0xe7   : > { %609 = vmatmul.mubr.f32.gmra.mrb[4].mxu1 %v220_v51 }
 0x192   : > { %v595_v52 = vpop.f32.mrb[0].mxu0 }
 0x193   : > { %v291_v53 = vpop.f32.mrb[1].mxu0 }
 0x194   : > { %v350_v54 = vadd.f32 %v595_v52, %v291_v53 }
 0x19a   : > { %v598_v55 = vpop.f32.mrb[2].mxu0 }
 0x19b   : > { %v301_v56 = vpop.f32.mrb[3].mxu0 }
 0x19c   : > { %v351_v57 = vadd.f32 %v350_v54, %v301_v56 }
 0x19e   : > { %v352_v58 = vadd.f32 %v598_v55, %v351_v57 }
 0x1a2   : > { %v601_v59 = vpop.f32.mrb[4].mxu0 }
 0x1a3   : > { %v311_v60 = vpop.f32.mrb[5].mxu0 }
 0x1a4   : > { %v353_v61 = vadd.f32 %v352_v58, %v311_v60 }
 0x1a6   : > { %v354_v62 = vadd.f32 %v601_v59, %v353_v61 }
 0x1aa   : > { %v604_v63 = vpop.f32.mrb[0].mxu1 }
 0x1ab   : > { %v321_v0 = vpop.f32.mrb[1].mxu1 }
 0x1ac   : > { %v355_v1 = vadd.f32 %v354_v62, %v321_v0 }
 0x1ae   : > { %v356_v2 = vadd.f32 %v604_v63, %v355_v1 }
 0x1b2   : > { %v607_v3 = vpop.f32.mrb[2].mxu1 }
 0x1b3   : > { %v331_v4 = vpop.f32.mrb[3].mxu1 }
 0x1b4   : > { %v357_v5 = vadd.f32 %v356_v2, %v331_v4 }
 0x1b6   : > { %v358_v6 = vadd.f32 %v607_v3, %v357_v5 }
 0x1ba   : > { %v610_v7 = vpop.f32.mrb[4].mxu1 }
 0x1bb   : > { %v341_v8 = vpop.f32.mrb[5].mxu1 }
 0x1bc   : > { %v359_v9 = vadd.f32 %v358_v6, %v341_v8 }
 0x1be   : > { %v360_v10 = vadd.f32 %v610_v7, %v359_v9 }
 0x1c0   : > { %v361_v11 = vrot.slane %v360_v10, 4 }
 0x1c2   : > { %v362_v12 = vadd.f32 %v361_v11, %v360_v10 }
 0x1c4   : > { %v363_v13 = vrot.slane %v362_v12, 2 }
 0x1c6   : > { %v364_v14 = vadd.f32 %v363_v13, %v362_v12 }
 0x1c8   : > { %v365_v15 = vrot.slane %v364_v14, 1 }
 0x1ca   : > { %v366_v16 = vadd.f32 %v365_v15, %v364_v14 }
 0x1cc   : > { %v368_v17 = vmul.f32 0.010416667, %v366_v16 }
 0x1ce   : > { %v369_v18 = vsub.f32 %v291_v53, %v368_v17  ;;  %v370_v19 = vsub.f32 %v595_v52, %v368_v17  ;;  %v371_v20 = vsub.f32 %v301_v56, %v368_v17  ;;  %v372_v21 = vsub.f32 %v598_v55, %v368_v17 }
 0x1cf   : > { %v373_v22 = vsub.f32 %v311_v60, %v368_v17  ;;  %v374_v23 = vsub.f32 %v601_v59, %v368_v17  ;;  %v375_v24 = vsub.f32 %v321_v0, %v368_v17  ;;  %v376_v25 = vsub.f32 %v604_v63, %v368_v17 }
 0x1d0   : > { %v377_v26 = vsub.f32 %v331_v4, %v368_v17  ;;  %v378_v27 = vsub.f32 %v607_v3, %v368_v17  ;;  %v379_v28 = vsub.f32 %v341_v8, %v368_v17  ;;  %v380_v29 = vsub.f32 %v610_v7, %v368_v17 }
 0x1d1   : > { %v381_v30 = vmul.f32 %v369_v18, %v369_v18  ;;  %v382_v31 = vmul.f32 %v370_v19, %v370_v19  ;;  %v383_v32 = vmul.f32 %v371_v20, %v371_v20  ;;  %v384_v34 = vmul.f32 %v372_v21, %v372_v21 }
 0x1d2   : > { %v385_v36 = vmul.f32 %v373_v22, %v373_v22  ;;  %v386_v38 = vmul.f32 %v374_v23, %v374_v23  ;;  %v387_v40 = vmul.f32 %v375_v24, %v375_v24  ;;  %v388_v42 = vmul.f32 %v376_v25, %v376_v25 }
 0x1d3   : > { %v393_v33 = vadd.f32 %v382_v31, %v381_v30  ;;  %v389_v44 = vmul.f32 %v377_v26, %v377_v26  ;;  %v390_v46 = vmul.f32 %v378_v27, %v378_v27  ;;  %v391_v48 = vmul.f32 %v379_v28, %v379_v28 }
 0x1d4   : > { %v392_v50 = vmul.f32 %v380_v29, %v380_v29 }
 0x1d5   : > { %v394_v35 = vadd.f32 %v393_v33, %v383_v32 }
 0x1d7   : > { %v395_v37 = vadd.f32 %v394_v35, %v384_v34 }
 0x1d9   : > { %v396_v39 = vadd.f32 %v395_v37, %v385_v36 }
 0x1db   : > { %v397_v41 = vadd.f32 %v396_v39, %v386_v38 }
 0x1dd   : > { %v398_v43 = vadd.f32 %v397_v41, %v387_v40 }
 0x1df   : > { %v399_v45 = vadd.f32 %v398_v43, %v388_v42 }
 0x1e1   : > { %v400_v47 = vadd.f32 %v399_v45, %v389_v44 }
 0x1e3   : > { %v401_v49 = vadd.f32 %v400_v47, %v390_v46 }
 0x1e5   : > { %v402_v51 = vadd.f32 %v401_v49, %v391_v48 }
 0x1e7   : > { %v403_v52 = vadd.f32 %v402_v51, %v392_v50 }
 0x1e9   : > { %v404_v53 = vrot.slane %v403_v52, 4 }
 0x1eb   : > { %v405_v54 = vadd.f32 %v404_v53, %v403_v52 }
 0x1ed   : > { %v406_v55 = vrot.slane %v405_v54, 2 }
 0x1ef   : > { %v407_v56 = vadd.f32 %v406_v55, %v405_v54 }
 0x1f1   : > { %v408_v57 = vrot.slane %v407_v56, 1 }
 0x1f3   : > { %v409_v58 = vadd.f32 %v408_v57, %v407_v56 }
 0x1f5   : > { %v410_v59 = vmul.f32 0.010416667, %v409_v58 }
 0x1f7   : > { %v411_v60 = vadd.f32 1e-05, %v410_v59 }
 0x1f9   : > { %712 = vrsqrt.f32 %v411_v60 }
 0x203   : > { %v713_v61 = vpop.eup %712 }
 0x204   : > { %v413_v62 = vmul.f32 %v713_v61, %v369_v18  ;;  %v414_v63 = vmul.f32 %v713_v61, %v370_v19  ;;  %v415_v0 = vmul.f32 %v713_v61, %v371_v20  ;;  %v416_v1 = vmul.f32 %v713_v61, %v372_v21 }
 0x205   : > { %v417_v2 = vmul.f32 %v713_v61, %v373_v22  ;;  %v418_v3 = vmul.f32 %v713_v61, %v374_v23  ;;  %v419_v4 = vmul.f32 %v713_v61, %v375_v24  ;;  %v420_v5 = vmul.f32 %v713_v61, %v376_v25 }
 0x206   : > { %v421_v6 = vmul.f32 %v713_v61, %v377_v26  ;;  %v422_v7 = vmul.f32 %v713_v61, %v378_v27  ;;  %v423_v8 = vmul.f32 %v713_v61, %v379_v28  ;;  %v424_v9 = vmul.f32 %v713_v61, %v380_v29  ;;  %425 = vst [vmem:[%s160_s6] sm:$0xff] %v413_v62 }
 0x207   : > { %426 = vst [vmem:[%s160_s6 + $0x8] sm:$0xff] %v414_v63  ;;  %427 = vst [vmem:[%s160_s6 + $0x10] sm:$0xff] %v415_v0 }
 0x208   : > { %428 = vst [vmem:[%s160_s6 + $0x18] sm:$0xff] %v416_v1  ;;  %429 = vst [vmem:[%s160_s6 + $0x20] sm:$0xff] %v417_v2 }
 0x209   : > { %430 = vst [vmem:[%s160_s6 + $0x28] sm:$0xff] %v418_v3  ;;  %431 = vst [vmem:[%s160_s6 + $0x30] sm:$0xff] %v419_v4 }
 0x20a   : > { %432 = vst [vmem:[%s160_s6 + $0x38] sm:$0xff] %v420_v5  ;;  %433 = vst [vmem:[%s160_s6 + $0x40] sm:$0xff] %v421_v6 }
 0x20b   : > { %434 = vst [vmem:[%s160_s6 + $0x48] sm:$0xff] %v422_v7  ;;  %435 = vst [vmem:[%s160_s6 + $0x50] sm:$0xff] %v423_v8 }
 0x20c   : > { %436 = vst [vmem:[%s160_s6 + $0x58] sm:$0xff] %v424_v9 }
 0x20d   : > { %757 = shalt.err (!%p754_p3)
}
 0x20e   : > { %s758_s16 = scalar_lea.hbm %s1020_s7, 1536  ;;  %s762_s23 = scalar_lea.hbm %s1068_s2, 3072 }
 0x20f   : > { %p759_p5 = scmp.ne.s32.totalorder %s1020_s7, %s758_s16  ;;  %p763_p9 = scmp.lt.u32.totalorder %s1020_s7, %s1068_s2 }
 0x210   : > { %p764_p0 = scmp.lt.u32.totalorder %s762_s23, %s758_s16  ;;  %p766_p6 = scmp.lt.u32.totalorder %s758_s16, %s1020_s7 }
 0x211   : > { %p760_p7 = pnand %p759_p5, %p1076_p11 }
 0x212   : > { %p765_p2 = por %p764_p0, %p763_p9 }
 0x213   : > { %p761_p8 = pneg %p760_p7 }
 0x214   : > { %p767_p12 = por %p766_p6, %p765_p2 }
 0x216   : > { %p768_p13 = pnand %p767_p12, %p761_p8 }
 0x218   : > { %771 = shalt.err (!%p768_p13)
}
 0x219   : > { %s817_s26 = smov 128   ;;  %s818_s27 = smov 256  }
 0x21a   : > { %s819_s5 = smov 8  }
 0x21b   : > { %662 = dma.vmem_to_hbm [thread:$0]  (%p1076_p11), %s1022_s28, 1536, %s1020_s7, %s438_s13, %s817_s26, %s818_s27, %s819_s5  }
 0x21c PF: > { %s465_s6 = sand.u32 1, %s798_s9   ;;  %p1077_p4 = scmp.ne.s32.totalorder %s1073_s22, 0 }
 0x21d   : > { %p1078_p10 = scmp.ge.s32.totalorder %s810_s12, 2  ;;  %s466_s30 = scalar_lea.sflag [#allocation4], %s465_s6 }
 0x21f   : > { %p669_p1 = pnand %p1078_p10, %p1077_p4 }
 0x221   : > { %793 = dma.done.wait (!%p669_p1), %s466_s30, 1536  }
 0x222   : > { %795 = vsyncadd (!%p669_p1), %s466_s30, 4294965760  ;;  %p15_p3 = scmp.ge.s32.totalorder %s860_s15, 4   ;;  %s1079_s9 = smov %s802_s10 }
 0x223   : > { %s1080_s10 = smov %s806_s11  ;;  %s1081_s11 = smov %s872_s18 }
 0x224   : > { %s1082_s12 = smov %s860_s15  ;;  %17 = sbr.rel (!%p15_p3) target bundleno = 5 (0x5), region = 73 }
 0x22b   :  { %471 = vsyncpa [#allocation3], 1 }
 0x22c   :  { %473 = vsyncpa [#allocation3 + $0x1], 1 }
 0x22d   :  { %474 = vsyncpa [#allocation4], 1 }
 0x22e   :  { %476 = vsyncpa [#allocation4 + $0x1], 1 }

</bundles_post_ra>
